<compile_context>
chip_gen: v7x
topology: tpu7x:2x2x1
jax: 0.10.0
libtpu: 0.0.40
codegen_flags: <defaults>
</compile_context>

<pallas_src>
import math

import jax
import jax.numpy as jnp
from jax.experimental import pallas as pl
from jax.experimental.pallas import tpu as pltpu


# ----------------------------- Pallas kernel ------------------------------ #
def time_emb_kernel(t_ref, table_ref, w1_ref, w2_ref, b_ref, o_ref):
    blk_b = t_ref.shape[0]
    T = table_ref.shape[0]

    # Fused embedding gather: one-hot (blk_b, T) @ table (T, d_model) on the MXU.
    # One-hot entries are exactly 0/1 -> emb == table[t] bit-exactly (f32 accum).
    t_col = t_ref[...]                                             # (blk_b, 1) int32
    iota = jax.lax.broadcasted_iota(jnp.int32, (blk_b, T), 1)      # (blk_b, T)
    onehot = (iota == t_col).astype(table_ref.dtype)               # (blk_b, T) f32
    emb = jnp.dot(onehot, table_ref[...],
                  preferred_element_type=jnp.float32)              # (blk_b, d_model) f32

    # Linear 1 -> sigmoid -> Linear 2.  Weights may be bf16 (wrapper pre-cast);
    # accumulate in f32 either way, bias add + sigmoid in f32 (EUP).
    mm_dtype = w1_ref.dtype
    h = jnp.dot(emb.astype(mm_dtype), w1_ref[...],
                preferred_element_type=jnp.float32)                # (blk_b, dim) f32
    h = h + b_ref[0:1, :]                                          # broadcast bias b1
    h = jax.nn.sigmoid(h)                                          # plain sigmoid (== "Swish" in spec)

    out = jnp.dot(h.astype(mm_dtype), w2_ref[...],
                  preferred_element_type=jnp.float32)              # (blk_b, dim) f32
    out = out + b_ref[1:2, :]                                      # broadcast bias b2
    o_ref[...] = out.astype(o_ref.dtype)


# ------------------------------- wrapper ----------------------------------- #
def time_embedding_forward(t, table, w1, b1, w2, b2, *,
                           block_b=256, matmul_dtype=jnp.float32):
    """t: int (B,) time-step indices. Returns (B, dim) float32.

    Weights are stored as (in, out) so the kernel computes y = x @ W + b
    (equivalent to PyTorch's y = x @ W_torch^T + b).
    """
    B = t.shape[0]
    T, d_model = table.shape
    dim = w1.shape[1]

    t_col = t.reshape(B, 1).astype(jnp.int32)
    table_f32 = table.astype(jnp.float32)               # keep the gather exact in f32
    w1c = w1.astype(matmul_dtype)                        # bf16 halves weight DMA, 2-4x MXU rate
    w2c = w2.astype(matmul_dtype)
    biases = jnp.stack([b1, b2]).astype(jnp.float32)     # (2, dim): one VMEM tile / one DMA

    if B <= block_b:
        # Small batch: single gridless invocation, whole arrays resident in VMEM.
        return pl.pallas_call(
            time_emb_kernel,
            out_shape=jax.ShapeDtypeStruct((B, dim), jnp.float32),
            in_specs=[pl.BlockSpec(memory_space=pltpu.MemorySpace.VMEM)] * 5,
            out_specs=pl.BlockSpec(memory_space=pltpu.MemorySpace.VMEM),
        )(t_col, table_f32, w1c, w2c, biases)

    # Large batch: tile over B with a "parallel" grid axis (sharded across the two
    # TensorCores on v7x); table / weights / biases index-map to block (0,0) so they
    # stay VMEM-resident while activation tiles stream with double-buffered DMA.
    block_b = max(8, (block_b // 8) * 8)
    n_blocks = pl.cdiv(B, block_b)
    B_pad = n_blocks * block_b
    if B_pad != B:
        t_col = jnp.pad(t_col, ((0, B_pad - B), (0, 0)))  # pad with valid index 0

    out = pl.pallas_call(
        time_emb_kernel,
        out_shape=jax.ShapeDtypeStruct((B_pad, dim), jnp.float32),
        grid=(n_blocks,),
        in_specs=[
            pl.BlockSpec((block_b, 1), lambda i: (i, 0)),
            pl.BlockSpec((T, d_model), lambda i: (0, 0)),
            pl.BlockSpec((d_model, dim), lambda i: (0, 0)),
            pl.BlockSpec((dim, dim), lambda i: (0, 0)),
            pl.BlockSpec((2, dim), lambda i: (0, 0)),
        ],
        out_specs=pl.BlockSpec((block_b, dim), lambda i: (i, 0)),
        compiler_params=pltpu.CompilerParams(
            dimension_semantics=("parallel",)),
    )(t_col, table_f32, w1c, w2c, biases)
    return out[:B]


# ------------------------- parameter construction ------------------------- #
def make_sinusoidal_table(T, d_model):
    """Matches the PyTorch constructor exactly (interleaved sin/cos)."""
    freqs = jnp.arange(0, d_model, 2, dtype=jnp.float32) / d_model * math.log(10000.0)
    freqs = jnp.exp(-freqs)                                     # (d_model//2,)
    pos = jnp.arange(T, dtype=jnp.float32)                      # (T,)
    args = pos[:, None] * freqs[None, :]                        # (T, d_model//2)
    table = jnp.stack([jnp.sin(args), jnp.cos(args)], axis=-1)  # (T, d_model//2, 2)
    return table.reshape(T, d_model)                            # (T, d_model)


def xavier_uniform(key, fan_in, fan_out):
    bound = math.sqrt(6.0 / (fan_in + fan_out))
    # stored as (in, out) so the kernel computes y = x @ W + b
    return jax.random.uniform(key, (fan_in, fan_out), jnp.float32, -bound, bound)


# --------------------------------- main ------------------------------------ #
if __name__ == "__main__":
    T = 16
    d_model = 32
    dim = d_model * 4        # 128

    key = jax.random.PRNGKey(0)
    k1, k2, kt1, kt2 = jax.random.split(key, 4)

    table = make_sinusoidal_table(T, d_model)            # (T, d_model)
    w1 = xavier_uniform(k1, d_model, dim)                # (d_model, dim)
    b1 = jnp.zeros((dim,), jnp.float32)
    w2 = xavier_uniform(k2, dim, dim)                    # (dim, dim)
    b2 = jnp.zeros((dim,), jnp.float32)

    def ref_forward(t_idx):                              # pure-JAX reference (same math)
        emb = table[t_idx]
        return jax.nn.sigmoid(emb @ w1 + b1) @ w2 + b2

    # 1) small batch -> single gridless invocation, f32 path (tight check)
    t_small = jax.random.randint(kt1, (8,), 0, T, dtype=jnp.int32)
    out_small = jax.block_until_ready(
        time_embedding_forward(t_small, table, w1, b1, w2, b2))
    assert out_small.shape == (8, dim)
    assert jnp.allclose(out_small, ref_forward(t_small), atol=1e-5, rtol=1e-5)

    # 2) larger batch -> tiled over B with a "parallel" grid axis, weights resident
    t_big = jax.random.randint(kt2, (64,), 0, T, dtype=jnp.int32)
    out_big = jax.block_until_ready(
        time_embedding_forward(t_big, table, w1, b1, w2, b2, block_b=32))
    assert out_big.shape == (64, dim)
    assert jnp.allclose(out_big, ref_forward(t_big), atol=1e-5, rtol=1e-5)

    # 3) bf16 MXU operands (f32 accumulation, f32 gather/bias/sigmoid) -> loose check
    out_bf16 = jax.block_until_ready(
        time_embedding_forward(t_small, table, w1, b1, w2, b2,
                               matmul_dtype=jnp.bfloat16))
    assert jnp.allclose(out_bf16, ref_forward(t_small), atol=5e-2, rtol=5e-2)

    print("KERNEL_OK")
</pallas_src>

<mosaic_0001>
module attributes {stable_mosaic.version = 11 : i64} {
  func.func @time_emb_kernel(%arg0: memref<8x1xi32, #tpu.memory_space<vmem>>, %arg1: memref<16x32xf32, #tpu.memory_space<vmem>>, %arg2: memref<32x128xf32, #tpu.memory_space<vmem>>, %arg3: memref<128x128xf32, #tpu.memory_space<vmem>>, %arg4: memref<2x128xf32, #tpu.memory_space<vmem>>, %arg5: memref<8x128xf32, #tpu.memory_space<vmem>>) attributes {dimension_semantics = [], scalar_prefetch = 0 : i64, scratch_operands = 0 : i64, tpu.core_type = #tpu.core_type<tc>} {
    %c0 = arith.constant 0 : index
    %c0_0 = arith.constant 0 : index
    %0 = vector.load %arg0[%c0, %c0_0] : memref<8x1xi32, #tpu.memory_space<vmem>>, vector<8x1xi32>
    %1 = tpu.iota {dimensions = array<i32: 1>} : vector<8x16xi32>
    %2 = vector.broadcast %0 : vector<8x1xi32> to vector<8x16xi32>
    %3 = arith.cmpi eq, %1, %2 : vector<8x16xi32>
    %4 = arith.extui %3 : vector<8x16xi1> to vector<8x16xi32>
    %5 = arith.sitofp %4 : vector<8x16xi32> to vector<8x16xf32>
    %c0_1 = arith.constant 0 : index
    %c0_2 = arith.constant 0 : index
    %6 = vector.load %arg1[%c0_1, %c0_2] : memref<16x32xf32, #tpu.memory_space<vmem>>, vector<16x32xf32>
    %cst = arith.constant dense<0.000000e+00> : vector<8x32xf32>
    %7 = tpu.matmul %5, %6, %cst {dimension_numbers = #tpu.dot_dimension_numbers<[1], [0], [0], [1], [0, 0, 1, 1], [], []>} : vector<8x16xf32>, vector<16x32xf32>, vector<8x32xf32> -> vector<8x32xf32>
    %c0_3 = arith.constant 0 : index
    %c0_4 = arith.constant 0 : index
    %8 = vector.load %arg2[%c0_3, %c0_4] : memref<32x128xf32, #tpu.memory_space<vmem>>, vector<32x128xf32>
    %cst_5 = arith.constant dense<0.000000e+00> : vector<8x128xf32>
    %9 = tpu.matmul %7, %8, %cst_5 {dimension_numbers = #tpu.dot_dimension_numbers<[1], [0], [0], [1], [0, 0, 1, 1], [], []>} : vector<8x32xf32>, vector<32x128xf32>, vector<8x128xf32> -> vector<8x128xf32>
    %c0_6 = arith.constant 0 : index
    %c0_7 = arith.constant 0 : index
    %10 = vector.load %arg4[%c0_6, %c0_7] : memref<2x128xf32, #tpu.memory_space<vmem>>, vector<1x128xf32>
    %11 = vector.broadcast %10 : vector<1x128xf32> to vector<8x128xf32>
    %12 = arith.addf %9, %11 : vector<8x128xf32>
    %13 = arith.negf %12 : vector<8x128xf32>
    %14 = math.exp %13 : vector<8x128xf32>
    %cst_8 = arith.constant 1.000000e+00 : f32
    %15 = vector.broadcast %cst_8 : f32 to vector<8x128xf32>
    %16 = arith.addf %15, %14 : vector<8x128xf32>
    %17 = arith.divf %15, %16 : vector<8x128xf32>
    %c0_9 = arith.constant 0 : index
    %c0_10 = arith.constant 0 : index
    %18 = vector.load %arg3[%c0_9, %c0_10] : memref<128x128xf32, #tpu.memory_space<vmem>>, vector<128x128xf32>
    %cst_11 = arith.constant dense<0.000000e+00> : vector<8x128xf32>
    %19 = tpu.matmul %17, %18, %cst_11 {dimension_numbers = #tpu.dot_dimension_numbers<[1], [0], [0], [1], [0, 0, 1, 1], [], []>} : vector<8x128xf32>, vector<128x128xf32>, vector<8x128xf32> -> vector<8x128xf32>
    %c1 = arith.constant 1 : index
    %c0_12 = arith.constant 0 : index
    %20 = vector.load %arg4[%c1, %c0_12] : memref<2x128xf32, #tpu.memory_space<vmem>>, vector<1x128xf32>
    %21 = vector.broadcast %20 : vector<1x128xf32> to vector<8x128xf32>
    %22 = arith.addf %19, %21 : vector<8x128xf32>
    %c0_13 = arith.constant 0 : index
    %c0_14 = arith.constant 0 : index
    %23 = vector.load %arg5[%c0_13, %c0_14] : memref<8x128xf32, #tpu.memory_space<vmem>>, vector<8x128xf32>
    tpu.vector_store %arg5[%c0_13, %c0_14], %22 {strides = array<i32>} : memref<8x128xf32, #tpu.memory_space<vmem>>, vector<8x128xf32>,
    return
  }
}

</mosaic_0001>

<bundles_post_ra>
// kernel: tpu_custom_call.1
= control target key start
LH: loop header
LB: loop body
LE: loop exit
PB: predicated region body
PF: predicated region fallthrough
CT: control target
= control target key end

     0   :  { %10 = vsyncpa [#allocation3], 0  ;;  %s697_s0 = inlined_call_operand.vmem [shape: s32[8,1], index: 0, kind: input, shape index: {}]   ;;  %s698_s1 = inlined_call_operand.hbm [shape: f32[16,32], index: 1, kind: input, shape index: {}]   ;;  %s699_s2 = inlined_call_operand.hbm [shape: f32[32,128], index: 2, kind: input, shape index: {}]   ;;  %s700_s3 = inlined_call_operand.hbm [shape: f32[128,128], index: 3, kind: input, shape index: {}]   ;;  %s701_s4 = inlined_call_operand.vmem [shape: f32[2,128], index: 4, kind: input, shape index: {}]   ;;  %s702_s5 = inlined_call_operand.hbm [shape: f32[8,128], index: 5, kind: output, shape index: {}]  }
   0x1   :  { %11 = vsyncpa [#allocation6], 0 }
   0x2   :  { %12 = vsyncpa [#allocation4], 0  ;;  %s570_s18 = smov [#allocation5]   ;;  %s571_s20 = smov [#allocation2]  }
   0x3   :  { %s32_s19 = sshll.u32 %s570_s18, 4  ;;  %s20_s21 = sshll.u32 %s571_s20, 4  ;;  %s33_s19 = int_to_ptr.vmem [resolvable:$true] %s32_s19  ;;  %s610_s21 = int_to_ptr.vmem [resolvable:$true] %s20_s21 }
   0x4   :  { %s476_s24 = scalar_lea.hbm %s699_s2, 512 }
   0x5   :  { %p477_p0 = scmp.ne.s32.totalorder %s699_s2, %s476_s24  ;;  %p480_p1 = scmp.lt.u32.totalorder %s476_s24, %s699_s2 }
   0x7   :  { %p482_p2 = pnand %p480_p1, %p477_p0 }
   0x9   :  { %485 = shalt.err (!%p482_p2)
}
   0xa   :  { %s486_s29 = scalar_lea.vmem %s33_s19, 512  ;;  %p491_p4 = scmp.lt.s32.totalorder %s33_s19, %s33_s19 }
   0xb   :  { %p487_p3 = scmp.ne.s32.totalorder %s33_s19, %s486_s29  ;;  %p492_p5 = scmp.lt.s32.totalorder %s486_s29, %s486_s29 }
   0xd   :  { %p493_p6 = por %p492_p5, %p491_p4 }
   0xf   :  { %p494_p7 = pnand %p493_p6, %p487_p3 }
  0x11   :  { %497 = shalt.err (!%p494_p7)
}
  0x12   :  { %s572_s30 = smov 128   ;;  %s573_s6 = smov 8  }
  0x13   :  { %38 = dma.hbm_to_vmem [thread:$0]  %s699_s2, 512, %s33_s19, [#allocation6], %s572_s30, %s572_s30, %s573_s6  }
  0x14   :  { %s498_s11 = scalar_lea.hbm %s698_s1, 256 }
  0x15   :  { %p499_p8 = scmp.ne.s32.totalorder %s698_s1, %s498_s11  ;;  %p502_p9 = scmp.lt.u32.totalorder %s498_s11, %s698_s1 }
  0x17   :  { %p504_p10 = pnand %p502_p9, %p499_p8 }
  0x19   :  { %507 = shalt.err (!%p504_p10)
}
  0x1a   :  { %s508_s16 = scalar_lea.vmem %s610_s21, 256  ;;  %p513_p12 = scmp.lt.s32.totalorder %s610_s21, %s610_s21 }
  0x1b   :  { %p509_p11 = scmp.ne.s32.totalorder %s610_s21, %s508_s16  ;;  %p514_p13 = scmp.lt.s32.totalorder %s508_s16, %s508_s16 }
  0x1d   :  { %p515_p0 = por %p514_p13, %p513_p12 }
  0x1f   :  { %p516_p1 = pnand %p515_p0, %p509_p11 }
  0x21   :  { %519 = shalt.err (!%p516_p1)
}
  0x22   :  { %26 = dma.hbm_to_vmem [thread:$0]  %s698_s1, 256, %s610_s21, [#allocation3], %s572_s30, %s572_s30, %s573_s6  }
  0x23   :  { %s574_s18 = smov [#allocation7]   ;;  %s520_s23 = scalar_lea.hbm %s700_s3, 2048 }
  0x24   :  { %s44_s19 = sshll.u32 %s574_s18, 4  ;;  %p521_p2 = scmp.ne.s32.totalorder %s700_s3, %s520_s23  ;;  %s45_s19 = int_to_ptr.vmem [resolvable:$true] %s44_s19 }
  0x25   :  { %p524_p3 = scmp.lt.u32.totalorder %s520_s23, %s700_s3 }
  0x27   :  { %p526_p4 = pnand %p524_p3, %p521_p2 }
  0x29   :  { %529 = shalt.err (!%p526_p4)
}
  0x2a   :  { %s530_s28 = scalar_lea.vmem %s45_s19, 2048  ;;  %p535_p6 = scmp.lt.s32.totalorder %s45_s19, %s45_s19 }
  0x2b   :  { %p531_p5 = scmp.ne.s32.totalorder %s45_s19, %s530_s28  ;;  %p536_p7 = scmp.lt.s32.totalorder %s530_s28, %s530_s28 }
  0x2d   :  { %p537_p8 = por %p536_p7, %p535_p6 }
  0x2f   :  { %p538_p9 = pnand %p537_p8, %p531_p5 }
  0x31   :  { %541 = shalt.err (!%p538_p9)
}
  0x32   :  { %50 = dma.hbm_to_vmem [thread:$0]  %s700_s3, 2048, %s45_s19, [#allocation6], %s572_s30, %s572_s30, %s573_s6  }
  0x33   :  { %564 = dma.done.wait [#allocation3], 256  }
  0x34   :  { %565 = vsyncadd [#allocation3], 4294967040 }
  0x35   :  { %566 = dma.done.wait [#allocation6], 2560  }
  0x36   :  { %567 = vsyncadd [#allocation6], 4294964736  ;;  %v575_v0 = vmov 0   ;;  %v576_v1 = vmov 0.0|0.0   ;;  %v62_v2 = vld [vmem:[%s697_s0] sm:$0xff]  ;;  %v72_v4 = vld [vmem:[#allocation2 + $0x8] sm:$0xff]  ;;  %v63_v7 = vlaneseq }
  0x37   :  { %471 = vset.pattern.permute.xlu0 %v575_v0  ;;  %428 = vmatprep.subr.bf16.mxu1 %v576_v1  ;;  %v71_v3 = vld [vmem:[#allocation2] sm:$0xff]  ;;  %vm577_vm0 = vmmov 0   ;;  %v578_v6 = vmov 0.0   ;;  %v147_v9 = vld [vmem:[#allocation5] sm:$0xff]  ;;  %v148_v10 = vld [vmem:[#allocation5 + $0x8] sm:$0xff]  ;;  %vm73_vm1 = vcmask 130048  }
  0x38   :  { %437 = vmatprep.subr.bf16.mxu0 %v576_v1  ;;  %66 = vperm.xlu0 %471, %v62_v2   ;;  %v429_v5 = vpack.c.bf16 %v72_v4, %v71_v3  ;;  %v64_v8 = vand.u32 127, %v63_v7  ;;  %v432_v12 = vpack.c.bf16 %v148_v10, %v147_v9  ;;  %v149_v13 = vld [vmem:[#allocation5 + $0x10] sm:$0xff]  ;;  %v150_v14 = vld [vmem:[#allocation5 + $0x18] sm:$0xff]  ;;  %v236_v17 = vld [vmem:[#allocation7] sm:$0xff]  ;;  %vm156_vm3 = vcmask 261120   ;;  %s579_s8 = smov [#allocation8]  }
  0x39   :  { %379 = vmatprep.mubr.msk.f32.mxu1 %vm577_vm0, %v578_v6  ;;  %425 = vmatprep.mubr.msk.f32.mxu0 %vm577_vm0, %v578_v6  ;;  %v435_v16 = vpack.c.bf16 %v150_v14, %v149_v13  ;;  %v237_v18 = vld [vmem:[#allocation7 + $0x8] sm:$0xff]  ;;  %v238_v22 = vld [vmem:[#allocation7 + $0x10] sm:$0xff]  ;;  %v239_v23 = vld [vmem:[#allocation7 + $0x18] sm:$0xff]  ;;  %s334_s9 = sshll.u32 %s579_s8, 4  ;;  %s335_s9 = int_to_ptr.vmem [resolvable:$true] %s334_s9 }
  0x3a   :  { %430 = vmatpush3.bf16.msra.mxu1 %v429_v5  ;;  %v438_v19 = vpack.c.bf16 %v237_v18, %v236_v17  ;;  %v441_v24 = vpack.c.bf16 %v239_v23, %v238_v22  ;;  %v240_v25 = vld [vmem:[#allocation7 + $0x20] sm:$0xff]  ;;  %v241_v26 = vld [vmem:[#allocation7 + $0x28] sm:$0xff]  ;;  %v242_v28 = vld [vmem:[#allocation7 + $0x30] sm:$0xff]  ;;  %s542_s10 = scalar_lea.vmem %s335_s9, 128  ;;  %p547_p11 = scmp.lt.s32.totalorder %s335_s9, %s335_s9 }
  0x3b   :  { %431 = vmatprep.subr.bf16.mxu1 %v576_v1  ;;  %v444_v27 = vpack.c.bf16 %v241_v26, %v240_v25  ;;  %v243_v29 = vld [vmem:[#allocation7 + $0x38] sm:$0xff]  ;;  %v244_v31 = vld [vmem:[#allocation7 + $0x40] sm:$0xff]  ;;  %v245_v32 = vld [vmem:[#allocation7 + $0x48] sm:$0xff]  ;;  %p543_p10 = scmp.ne.s32.totalorder %s335_s9, %s542_s10  ;;  %p548_p12 = scmp.lt.s32.totalorder %s542_s10, %s542_s10 }
  0x3c   :  { %439 = vmatpush3.bf16.msra.mxu0 %v438_v19  ;;  %v447_v30 = vpack.c.bf16 %v243_v29, %v242_v28  ;;  %v450_v33 = vpack.c.bf16 %v245_v32, %v244_v31  ;;  %v246_v34 = vld [vmem:[#allocation7 + $0x50] sm:$0xff]  ;;  %v247_v35 = vld [vmem:[#allocation7 + $0x58] sm:$0xff]  ;;  %v248_v37 = vld [vmem:[#allocation7 + $0x60] sm:$0xff] }
  0x3d   :  { %440 = vmatprep.subr.bf16.mxu0 %v576_v1  ;;  %v453_v36 = vpack.c.bf16 %v247_v35, %v246_v34  ;;  %v249_v38 = vld [vmem:[#allocation7 + $0x68] sm:$0xff]  ;;  %v250_v40 = vld [vmem:[#allocation7 + $0x70] sm:$0xff]  ;;  %v251_v41 = vld [vmem:[#allocation7 + $0x78] sm:$0xff]  ;;  %p549_p13 = por %p548_p12, %p547_p11 }
  0x3e   :  { %v456_v39 = vpack.c.bf16 %v249_v38, %v248_v37  ;;  %v459_v42 = vpack.c.bf16 %v251_v41, %v250_v40  ;;  %v346_v43 = vld [vmem:[%s701_s4] ss:$0 sm:$0xff]  ;;  %v349_v51 = vld [vmem:[%s701_s4 + $0x1] ss:$0 sm:$0xff] }
  0x3f   :  { %p550_p0 = pnand %p549_p13, %p543_p10 }
  0x40   :  { %442 = vmatpush3.bf16.msra.mxu0 %v441_v24 }
  0x41   :  { %443 = vmatprep.subr.bf16.mxu0 %v576_v1 }
  0x44   :  { %445 = vmatpush3.bf16.msra.mxu0 %v444_v27 }
  0x45   :  { %446 = vmatprep.subr.bf16.mxu0 %v576_v1 }
  0x48   :  { %448 = vmatpush3.bf16.msra.mxu0 %v447_v30 }
  0x49   :  { %449 = vmatprep.subr.bf16.mxu0 %v576_v1 }
  0x4c   :  { %451 = vmatpush3.bf16.msra.mxu0 %v450_v33 }
  0x4d   :  { %452 = vmatprep.subr.bf16.mxu0 %v576_v1 }
  0x50   :  { %454 = vmatpush3.bf16.msra.mxu0 %v453_v36 }
  0x51   :  { %455 = vmatprep.subr.bf16.mxu0 %v576_v1 }
  0x54   :  { %457 = vmatpush3.bf16.msra.mxu0 %v456_v39 }
  0x55   :  { %458 = vmatprep.subr.bf16.mxu0 %v576_v1 }
  0x58   :  { %460 = vmatpush3.bf16.msra.mxu0 %v459_v42 }
  0xb7   :  { %v67_v11 = vpop.permute.xlu0 %66 }
  0xb8   :  { %vm68_vm2 = vcmp.eq.s32.totalorder %v64_v8, %v67_v11 }
  0xb9   :  { %v344_v15 = vsel %vm68_vm2, 1.0, %v578_v6 }
  0xba   :  { %380 = vmatmul.mubr.msk.f32.vlgmr.msra.gmra.mrb[0].mxu1 %vm73_vm1, %v344_v15 }
  0xbb   :  { %433 = vmatpush3.bf16.msra.mxu1 %v432_v12  ;;  %390 = vmatprep.mubr.msk.f32.mxu1 %vm577_vm0, %v578_v6 }
  0xbc   :  { %434 = vmatprep.subr.bf16.mxu1 %v576_v1 }
  0xbf   :  { %436 = vmatpush3.bf16.msra.mxu1 %v435_v16 }
 0x18d   :  { %v143_v20 = vpop.f32.mrb[0].mxu1 }
 0x18e   :  { %v381_v21 = vpop.f32.mrb[1].mxu1  ;;  %391 = vmatmul.mubr.msk.f32.vlgmr.msra.gmra.mrb[2].mxu1 %vm156_vm3, %v143_v20 }
 0x261   :  { %v226_v44 = vpop.f32.mrb[2].mxu1 }
 0x262   :  { %v227_v45 = vadd.f32 %v346_v43, %v226_v44  ;;  %v392_v46 = vpop.f32.mrb[3].mxu1 }
 0x264   :  { %v348_v47 = vmul.f32 -1.442695, %v227_v45 }
 0x266   :  { %472 = vpow2.f32 %v348_v47 }
 0x270   :  { %v473_v48 = vpop.eup %472 }
 0x271   :  { %v233_v49 = vadd.f32 1.0, %v473_v48 }
 0x273   :  { %474 = vrcp.f32 %v233_v49 }
 0x27d   :  { %v475_v50 = vpop.eup %474 }
 0x27e   :  { %426 = vmatmul.mubr.f32.vlgmr.msra.gmra.mrb[0].mxu0 %v475_v50 }
 0x351   :  { %v323_v52 = vpop.f32.mrb[0].mxu0 }
 0x352   :  { %v324_v53 = vadd.f32 %v349_v51, %v323_v52  ;;  %v427_v54 = vpop.f32.mrb[1].mxu0 }
 0x354   :  { %327 = vst [vmem:[#allocation8] sm:$0xff] %v324_v53 }
 0x355   :  { %553 = shalt.err (!%p550_p0)
}
 0x356   :  { %s554_s13 = scalar_lea.hbm %s702_s5, 128 }
 0x357   :  { %p555_p1 = scmp.ne.s32.totalorder %s702_s5, %s554_s13  ;;  %p558_p2 = scmp.lt.u32.totalorder %s554_s13, %s702_s5 }
 0x359   :  { %p560_p3 = pnand %p558_p2, %p555_p1 }
 0x35b   :  { %563 = shalt.err (!%p560_p3)
}
 0x35c   :  { %337 = dma.vmem_to_hbm [thread:$0]  %s335_s9, 128, %s702_s5, [#allocation4]  }
 0x35d   :  { %568 = dma.done.wait [#allocation4], 128  }
 0x35e   :  { %569 = vsyncadd [#allocation4], 4294967168 }
 0x35f   :  { %341 = vsyncpa [#allocation3], 1 }
 0x360   :  { %342 = vsyncpa [#allocation6], 1 }
 0x361   :  { %343 = vsyncpa [#allocation4], 1 }

</bundles_post_ra>
